<compile_context>
chip_gen: v7x
topology: tpu7x:2x2x1
jax: 0.10.0
libtpu: 0.0.40
codegen_flags: <defaults>
</compile_context>

<pallas_src>
import functools

import jax
import jax.numpy as jnp
import numpy as np
from jax.experimental import pallas as pl
from jax.experimental.pallas import tpu as pltpu

K_SIZE, STRIDE, PAD = 7, 4, 2


def _fused_kernel(p_ref, wc_ref, bc_ref, wf_ref, bf_ref, o_ref, acc_ref, slab_ref,
                  *, n, hw, c2):
    # Conv: one big bf16 MXU matmul over all (spatial, sample) rows:
    #   (hw*n, Kdim) @ (Kdim, C2) -> f32 accumulator in VMEM scratch.
    acc_ref[...] = (
        jnp.dot(p_ref[...], wc_ref[...], preferred_element_type=jnp.float32)
        + bc_ref[...])

    # Relayout (hw*n + b, c2) -> (b, hw*c2 + c2) entirely inside VMEM.
    # The FC then sees a lane-dense (n, 128) slab: no HBM round-trip of the conv
    # output, no XLA transpose, no narrow masked HBM stores of the intermediate.
    for t in range(hw):
        slab_ref[:, t * c2:(t + 1) * c2] = acc_ref[t * n:(t + 1) * n, :]

    # FC: (n, hw*c2) @ (hw*c2, C_out) with trace-time permuted weights (K = 128).
    out = jnp.dot(slab_ref[...].astype(jnp.bfloat16), wf_ref[...],
                  preferred_element_type=jnp.float32)
    o_ref[...] = (out + bf_ref[...]).astype(o_ref.dtype)


def downsample_forward(x, conv_w, conv_b, fc_w, fc_b, k=K_SIZE, s=STRIDE, p=PAD):
    # Matches PyTorch DownSample.forward semantics (4D and 5D inputs).
    if x.ndim == 5:
        B, J, C, H, W = x.shape
        x = x.reshape(B * J, C, H, W)
    else:
        B, C, H, W = x.shape
        J = 1
    N = x.shape[0]
    C2 = conv_w.shape[0]
    C_out, F_in = fc_w.shape
    Ho = (H + 2 * p - k) // s + 1
    Wo = (W + 2 * p - k) // s + 1
    HW = Ho * Wo
    Kdim = C * k * k
    assert F_in == C2 * HW

    # ---- trace-time layout glue (single XLA ops, no HBM-heavy loops) -----------
    # im2col: (N, Kdim, Ho, Wo) -> rows ordered (ho, wo, sample): (HW*N, Kdim), bf16.
    px = jax.lax.conv_general_dilated_patches(
        x.astype(jnp.bfloat16), (k, k), (s, s), [(p, p), (p, p)])
    patches = px.transpose(2, 3, 0, 1).reshape(HW * N, Kdim)

    # Flatten the conv weight with the same primitive -> identical tap ordering.
    wp = jax.lax.conv_general_dilated_patches(conv_w, (k, k), (1, 1), 'VALID')
    wc = wp.reshape(C2, Kdim).T.astype(jnp.bfloat16)            # (Kdim, C2)
    bc = conv_b.reshape(1, C2).astype(jnp.float32)

    # FC weight permuted so it consumes the (hw, c2)-ordered slab directly
    # (PyTorch's x.view(N, -1) flattens the conv output in (c2, ho, wo) order).
    wf = (fc_w.T.reshape(C2, HW, C_out).transpose(1, 0, 2)
          .reshape(HW * C2, C_out).astype(jnp.bfloat16))        # (HW*C2, C_out)
    bf = fc_b.reshape(1, C_out).astype(jnp.float32)

    kernel = functools.partial(_fused_kernel, n=N, hw=HW, c2=C2)
    out = pl.pallas_call(
        kernel,
        out_shape=jax.ShapeDtypeStruct((N, C_out), jnp.float32),
        grid=(1,),
        in_specs=[
            pl.BlockSpec((HW * N, Kdim), lambda i: (0, 0)),
            pl.BlockSpec((Kdim, C2), lambda i: (0, 0)),
            pl.BlockSpec((1, C2), lambda i: (0, 0)),
            pl.BlockSpec((HW * C2, C_out), lambda i: (0, 0)),
            pl.BlockSpec((1, C_out), lambda i: (0, 0)),
        ],
        out_specs=pl.BlockSpec((N, C_out), lambda i: (0, 0)),
        scratch_shapes=[
            pltpu.VMEM((HW * N, C2), jnp.float32),   # conv accumulator (stays in VMEM)
            pltpu.VMEM((N, HW * C2), jnp.float32),   # lane-dense flatten slab (N, 128)
        ],
        compiler_params=pltpu.CompilerParams(
            dimension_semantics=("arbitrary",)),
    )(patches, wc, bc, wf, bf)

    return out.reshape(B, J, C_out)


def reference_forward(x, conv_w, conv_b, fc_w, fc_b, s=STRIDE, p=PAD):
    # Pure-JAX f32 reference mirroring the PyTorch module.
    if x.ndim == 5:
        B, J, C, H, W = x.shape
        x = x.reshape(B * J, C, H, W)
    else:
        B = x.shape[0]
        J = 1
    y = jax.lax.conv_general_dilated(
        x, conv_w, window_strides=(s, s), padding=((p, p), (p, p)),
        dimension_numbers=("NCHW", "OIHW", "NCHW"))
    y = y + conv_b[None, :, None, None]
    y = y.reshape(y.shape[0], -1)
    y = y @ fc_w.T + fc_b
    return y.reshape(B, J, -1)


if __name__ == "__main__":
    # Module config: DownSample(C_in=4, C_2d=8, C_out=32, shape=(16, 16))
    B, C_in, H, W = 2, 4, 16, 16
    C_2d, C_out = 8, 32
    shape = (H, W)

    key = jax.random.PRNGKey(0)
    kx, kx5, kcw, kcb, kfw, kfb = jax.random.split(key, 6)

    x = jax.random.normal(kx, (B, C_in, H, W), dtype=jnp.float32)

    # Deterministic parameter init (PyTorch-style uniform bounds).
    fan_conv = C_in * K_SIZE * K_SIZE
    bound_c = 1.0 / np.sqrt(fan_conv)
    conv_w = jax.random.uniform(kcw, (C_2d, C_in, K_SIZE, K_SIZE), jnp.float32,
                                -bound_c, bound_c)
    conv_b = jax.random.uniform(kcb, (C_2d,), jnp.float32, -bound_c, bound_c)

    F_in = C_2d * (shape[0] // STRIDE) * (shape[1] // STRIDE)
    bound_f = 1.0 / np.sqrt(F_in)
    fc_w = jax.random.uniform(kfw, (C_out, F_in), jnp.float32, -bound_f, bound_f)
    fc_b = jax.random.uniform(kfb, (C_out,), jnp.float32, -bound_f, bound_f)

    # 4D input path (PyTorch returns (B, 1, C_out) here too).
    out = jax.block_until_ready(downsample_forward(x, conv_w, conv_b, fc_w, fc_b))
    ref = reference_forward(x, conv_w, conv_b, fc_w, fc_b)
    assert out.shape == (B, 1, C_out), out.shape
    np.testing.assert_allclose(np.asarray(out), np.asarray(ref), rtol=2e-2, atol=2e-2)

    # 5D input path.
    x5 = jax.random.normal(kx5, (2, 3, C_in, H, W), dtype=jnp.float32)
    out5 = jax.block_until_ready(downsample_forward(x5, conv_w, conv_b, fc_w, fc_b))
    ref5 = reference_forward(x5, conv_w, conv_b, fc_w, fc_b)
    assert out5.shape == (2, 3, C_out), out5.shape
    np.testing.assert_allclose(np.asarray(out5), np.asarray(ref5), rtol=2e-2, atol=2e-2)

    print("KERNEL_OK")
</pallas_src>

<mosaic_0001>
module attributes {stable_mosaic.version = 11 : i64} {
  func.func @_fused_kernel(%arg0: i32, %arg1: memref<32x196xbf16, #tpu.memory_space<vmem>>, %arg2: memref<196x8xbf16, #tpu.memory_space<vmem>>, %arg3: memref<1x8xf32, #tpu.memory_space<vmem>>, %arg4: memref<128x32xbf16, #tpu.memory_space<vmem>>, %arg5: memref<1x32xf32, #tpu.memory_space<vmem>>, %arg6: memref<2x32xf32, #tpu.memory_space<vmem>>, %arg7: memref<32x8xf32, #tpu.memory_space<vmem>>, %arg8: memref<2x128xf32, #tpu.memory_space<vmem>>) attributes {dimension_semantics = [#tpu.dimension_semantics<arbitrary>], iteration_bounds = array<i64: 1>, scalar_prefetch = 0 : i64, scratch_operands = 2 : i64, tpu.core_type = #tpu.core_type<tc>, window_params = [{pipeline_mode = #tpu.pipeline_mode<synchronous>, transform_indices = @transform_0, window_bounds = array<i64: 32, 196>}, {pipeline_mode = #tpu.pipeline_mode<synchronous>, transform_indices = @transform_1, window_bounds = array<i64: 196, 8>}, {pipeline_mode = #tpu.pipeline_mode<synchronous>, transform_indices = @transform_2, window_bounds = array<i64: 1, 8>}, {pipeline_mode = #tpu.pipeline_mode<synchronous>, transform_indices = @transform_3, window_bounds = array<i64: 128, 32>}, {pipeline_mode = #tpu.pipeline_mode<synchronous>, transform_indices = @transform_4, window_bounds = array<i64: 1, 32>}, {pipeline_mode = #tpu.pipeline_mode<synchronous>, transform_indices = @transform_5, window_bounds = array<i64: 2, 32>}]} {
    %c0 = arith.constant 0 : index
    %c0_0 = arith.constant 0 : index
    %0 = vector.load %arg1[%c0, %c0_0] : memref<32x196xbf16, #tpu.memory_space<vmem>>, vector<32x196xbf16>
    %c0_1 = arith.constant 0 : index
    %c0_2 = arith.constant 0 : index
    %1 = vector.load %arg2[%c0_1, %c0_2] : memref<196x8xbf16, #tpu.memory_space<vmem>>, vector<196x8xbf16>
    %cst = arith.constant dense<0.000000e+00> : vector<32x8xf32>
    %2 = tpu.matmul %0, %1, %cst {dimension_numbers = #tpu.dot_dimension_numbers<[1], [0], [0], [1], [0, 0, 1, 1], [], []>} : vector<32x196xbf16>, vector<196x8xbf16>, vector<32x8xf32> -> vector<32x8xf32>
    %c0_3 = arith.constant 0 : index
    %c0_4 = arith.constant 0 : index
    %3 = vector.load %arg3[%c0_3, %c0_4] : memref<1x8xf32, #tpu.memory_space<vmem>>, vector<1x8xf32>
    %4 = vector.broadcast %3 : vector<1x8xf32> to vector<32x8xf32>
    %5 = arith.addf %2, %4 : vector<32x8xf32>
    %c0_5 = arith.constant 0 : index
    %c0_6 = arith.constant 0 : index
    %6 = vector.load %arg7[%c0_5, %c0_6] : memref<32x8xf32, #tpu.memory_space<vmem>>, vector<32x8xf32>
    tpu.vector_store %arg7[%c0_5, %c0_6], %5 {strides = array<i32>} : memref<32x8xf32, #tpu.memory_space<vmem>>, vector<32x8xf32>,
    %c0_7 = arith.constant 0 : index
    %c0_8 = arith.constant 0 : index
    %7 = vector.load %arg7[%c0_7, %c0_8] : memref<32x8xf32, #tpu.memory_space<vmem>>, vector<2x8xf32>
    %c0_9 = arith.constant 0 : index
    %c0_10 = arith.constant 0 : index
    %8 = vector.load %arg8[%c0_9, %c0_10] : memref<2x128xf32, #tpu.memory_space<vmem>>, vector<2x8xf32>
    tpu.vector_store %arg8[%c0_9, %c0_10], %7 {strides = array<i32>} : memref<2x128xf32, #tpu.memory_space<vmem>>, vector<2x8xf32>,
    %c2 = arith.constant 2 : index
    %c0_11 = arith.constant 0 : index
    %9 = vector.load %arg7[%c2, %c0_11] : memref<32x8xf32, #tpu.memory_space<vmem>>, vector<2x8xf32>
    %c0_12 = arith.constant 0 : index
    %c8 = arith.constant 8 : index
    %10 = vector.load %arg8[%c0_12, %c8] : memref<2x128xf32, #tpu.memory_space<vmem>>, vector<2x8xf32>
    tpu.vector_store %arg8[%c0_12, %c8], %9 {strides = array<i32>} : memref<2x128xf32, #tpu.memory_space<vmem>>, vector<2x8xf32>,
    %c4 = arith.constant 4 : index
    %c0_13 = arith.constant 0 : index
    %11 = vector.load %arg7[%c4, %c0_13] : memref<32x8xf32, #tpu.memory_space<vmem>>, vector<2x8xf32>
    %c0_14 = arith.constant 0 : index
    %c16 = arith.constant 16 : index
    %12 = vector.load %arg8[%c0_14, %c16] : memref<2x128xf32, #tpu.memory_space<vmem>>, vector<2x8xf32>
    tpu.vector_store %arg8[%c0_14, %c16], %11 {strides = array<i32>} : memref<2x128xf32, #tpu.memory_space<vmem>>, vector<2x8xf32>,
    %c6 = arith.constant 6 : index
    %c0_15 = arith.constant 0 : index
    %13 = vector.load %arg7[%c6, %c0_15] : memref<32x8xf32, #tpu.memory_space<vmem>>, vector<2x8xf32>
    %c0_16 = arith.constant 0 : index
    %c24 = arith.constant 24 : index
    %14 = vector.load %arg8[%c0_16, %c24] : memref<2x128xf32, #tpu.memory_space<vmem>>, vector<2x8xf32>
    tpu.vector_store %arg8[%c0_16, %c24], %13 {strides = array<i32>} : memref<2x128xf32, #tpu.memory_space<vmem>>, vector<2x8xf32>,
    %c8_17 = arith.constant 8 : index
    %c0_18 = arith.constant 0 : index
    %15 = vector.load %arg7[%c8_17, %c0_18] : memref<32x8xf32, #tpu.memory_space<vmem>>, vector<2x8xf32>
    %c0_19 = arith.constant 0 : index
    %c32 = arith.constant 32 : index
    %16 = vector.load %arg8[%c0_19, %c32] : memref<2x128xf32, #tpu.memory_space<vmem>>, vector<2x8xf32>
    tpu.vector_store %arg8[%c0_19, %c32], %15 {strides = array<i32>} : memref<2x128xf32, #tpu.memory_space<vmem>>, vector<2x8xf32>,
    %c10 = arith.constant 10 : index
    %c0_20 = arith.constant 0 : index
    %17 = vector.load %arg7[%c10, %c0_20] : memref<32x8xf32, #tpu.memory_space<vmem>>, vector<2x8xf32>
    %c0_21 = arith.constant 0 : index
    %c40 = arith.constant 40 : index
    %18 = vector.load %arg8[%c0_21, %c40] : memref<2x128xf32, #tpu.memory_space<vmem>>, vector<2x8xf32>
    tpu.vector_store %arg8[%c0_21, %c40], %17 {strides = array<i32>} : memref<2x128xf32, #tpu.memory_space<vmem>>, vector<2x8xf32>,
    %c12 = arith.constant 12 : index
    %c0_22 = arith.constant 0 : index
    %19 = vector.load %arg7[%c12, %c0_22] : memref<32x8xf32, #tpu.memory_space<vmem>>, vector<2x8xf32>
    %c0_23 = arith.constant 0 : index
    %c48 = arith.constant 48 : index
    %20 = vector.load %arg8[%c0_23, %c48] : memref<2x128xf32, #tpu.memory_space<vmem>>, vector<2x8xf32>
    tpu.vector_store %arg8[%c0_23, %c48], %19 {strides = array<i32>} : memref<2x128xf32, #tpu.memory_space<vmem>>, vector<2x8xf32>,
    %c14 = arith.constant 14 : index
    %c0_24 = arith.constant 0 : index
    %21 = vector.load %arg7[%c14, %c0_24] : memref<32x8xf32, #tpu.memory_space<vmem>>, vector<2x8xf32>
    %c0_25 = arith.constant 0 : index
    %c56 = arith.constant 56 : index
    %22 = vector.load %arg8[%c0_25, %c56] : memref<2x128xf32, #tpu.memory_space<vmem>>, vector<2x8xf32>
    tpu.vector_store %arg8[%c0_25, %c56], %21 {strides = array<i32>} : memref<2x128xf32, #tpu.memory_space<vmem>>, vector<2x8xf32>,
    %c16_26 = arith.constant 16 : index
    %c0_27 = arith.constant 0 : index
    %23 = vector.load %arg7[%c16_26, %c0_27] : memref<32x8xf32, #tpu.memory_space<vmem>>, vector<2x8xf32>
    %c0_28 = arith.constant 0 : index
    %c64 = arith.constant 64 : index
    %24 = vector.load %arg8[%c0_28, %c64] : memref<2x128xf32, #tpu.memory_space<vmem>>, vector<2x8xf32>
    tpu.vector_store %arg8[%c0_28, %c64], %23 {strides = array<i32>} : memref<2x128xf32, #tpu.memory_space<vmem>>, vector<2x8xf32>,
    %c18 = arith.constant 18 : index
    %c0_29 = arith.constant 0 : index
    %25 = vector.load %arg7[%c18, %c0_29] : memref<32x8xf32, #tpu.memory_space<vmem>>, vector<2x8xf32>
    %c0_30 = arith.constant 0 : index
    %c72 = arith.constant 72 : index
    %26 = vector.load %arg8[%c0_30, %c72] : memref<2x128xf32, #tpu.memory_space<vmem>>, vector<2x8xf32>
    tpu.vector_store %arg8[%c0_30, %c72], %25 {strides = array<i32>} : memref<2x128xf32, #tpu.memory_space<vmem>>, vector<2x8xf32>,
    %c20 = arith.constant 20 : index
    %c0_31 = arith.constant 0 : index
    %27 = vector.load %arg7[%c20, %c0_31] : memref<32x8xf32, #tpu.memory_space<vmem>>, vector<2x8xf32>
    %c0_32 = arith.constant 0 : index
    %c80 = arith.constant 80 : index
    %28 = vector.load %arg8[%c0_32, %c80] : memref<2x128xf32, #tpu.memory_space<vmem>>, vector<2x8xf32>
    tpu.vector_store %arg8[%c0_32, %c80], %27 {strides = array<i32>} : memref<2x128xf32, #tpu.memory_space<vmem>>, vector<2x8xf32>,
    %c22 = arith.constant 22 : index
    %c0_33 = arith.constant 0 : index
    %29 = vector.load %arg7[%c22, %c0_33] : memref<32x8xf32, #tpu.memory_space<vmem>>, vector<2x8xf32>
    %c0_34 = arith.constant 0 : index
    %c88 = arith.constant 88 : index
    %30 = vector.load %arg8[%c0_34, %c88] : memref<2x128xf32, #tpu.memory_space<vmem>>, vector<2x8xf32>
    tpu.vector_store %arg8[%c0_34, %c88], %29 {strides = array<i32>} : memref<2x128xf32, #tpu.memory_space<vmem>>, vector<2x8xf32>,
    %c24_35 = arith.constant 24 : index
    %c0_36 = arith.constant 0 : index
    %31 = vector.load %arg7[%c24_35, %c0_36] : memref<32x8xf32, #tpu.memory_space<vmem>>, vector<2x8xf32>
    %c0_37 = arith.constant 0 : index
    %c96 = arith.constant 96 : index
    %32 = vector.load %arg8[%c0_37, %c96] : memref<2x128xf32, #tpu.memory_space<vmem>>, vector<2x8xf32>
    tpu.vector_store %arg8[%c0_37, %c96], %31 {strides = array<i32>} : memref<2x128xf32, #tpu.memory_space<vmem>>, vector<2x8xf32>,
    %c26 = arith.constant 26 : index
    %c0_38 = arith.constant 0 : index
    %33 = vector.load %arg7[%c26, %c0_38] : memref<32x8xf32, #tpu.memory_space<vmem>>, vector<2x8xf32>
    %c0_39 = arith.constant 0 : index
    %c104 = arith.constant 104 : index
    %34 = vector.load %arg8[%c0_39, %c104] : memref<2x128xf32, #tpu.memory_space<vmem>>, vector<2x8xf32>
    tpu.vector_store %arg8[%c0_39, %c104], %33 {strides = array<i32>} : memref<2x128xf32, #tpu.memory_space<vmem>>, vector<2x8xf32>,
    %c28 = arith.constant 28 : index
    %c0_40 = arith.constant 0 : index
    %35 = vector.load %arg7[%c28, %c0_40] : memref<32x8xf32, #tpu.memory_space<vmem>>, vector<2x8xf32>
    %c0_41 = arith.constant 0 : index
    %c112 = arith.constant 112 : index
    %36 = vector.load %arg8[%c0_41, %c112] : memref<2x128xf32, #tpu.memory_space<vmem>>, vector<2x8xf32>
    tpu.vector_store %arg8[%c0_41, %c112], %35 {strides = array<i32>} : memref<2x128xf32, #tpu.memory_space<vmem>>, vector<2x8xf32>,
    %c30 = arith.constant 30 : index
    %c0_42 = arith.constant 0 : index
    %37 = vector.load %arg7[%c30, %c0_42] : memref<32x8xf32, #tpu.memory_space<vmem>>, vector<2x8xf32>
    %c0_43 = arith.constant 0 : index
    %c120 = arith.constant 120 : index
    %38 = vector.load %arg8[%c0_43, %c120] : memref<2x128xf32, #tpu.memory_space<vmem>>, vector<2x8xf32>
    tpu.vector_store %arg8[%c0_43, %c120], %37 {strides = array<i32>} : memref<2x128xf32, #tpu.memory_space<vmem>>, vector<2x8xf32>,
    %c0_44 = arith.constant 0 : index
    %c0_45 = arith.constant 0 : index
    %39 = vector.load %arg8[%c0_44, %c0_45] : memref<2x128xf32, #tpu.memory_space<vmem>>, vector<2x128xf32>
    %40 = arith.truncf %39 : vector<2x128xf32> to vector<2x128xbf16>
    %c0_46 = arith.constant 0 : index
    %c0_47 = arith.constant 0 : index
    %41 = vector.load %arg4[%c0_46, %c0_47] : memref<128x32xbf16, #tpu.memory_space<vmem>>, vector<128x32xbf16>
    %cst_48 = arith.constant dense<0.000000e+00> : vector<2x32xf32>
    %42 = tpu.matmul %40, %41, %cst_48 {dimension_numbers = #tpu.dot_dimension_numbers<[1], [0], [0], [1], [0, 0, 1, 1], [], []>} : vector<2x128xbf16>, vector<128x32xbf16>, vector<2x32xf32> -> vector<2x32xf32>
    %c0_49 = arith.constant 0 : index
    %c0_50 = arith.constant 0 : index
    %43 = vector.load %arg5[%c0_49, %c0_50] : memref<1x32xf32, #tpu.memory_space<vmem>>, vector<1x32xf32>
    %44 = vector.broadcast %43 : vector<1x32xf32> to vector<2x32xf32>
    %45 = arith.addf %42, %44 : vector<2x32xf32>
    %c0_51 = arith.constant 0 : index
    %c0_52 = arith.constant 0 : index
    %46 = vector.load %arg6[%c0_51, %c0_52] : memref<2x32xf32, #tpu.memory_space<vmem>>, vector<2x32xf32>
    tpu.vector_store %arg6[%c0_51, %c0_52], %45 {strides = array<i32>} : memref<2x32xf32, #tpu.memory_space<vmem>>, vector<2x32xf32>,
    return
  }
  func.func @transform_0(%arg0: i32) -> (i32, i32) {
    %c0_i32 = arith.constant 0 : i32
    %c0_i32_0 = arith.constant 0 : i32
    %c0_i32_1 = arith.constant 0 : i32
    return %c0_i32, %c0_i32_0 : i32, i32
  }
  func.func @transform_1(%arg0: i32) -> (i32, i32) {
    %c0_i32 = arith.constant 0 : i32
    %c0_i32_0 = arith.constant 0 : i32
    %c0_i32_1 = arith.constant 0 : i32
    return %c0_i32, %c0_i32_0 : i32, i32
  }
  func.func @transform_2(%arg0: i32) -> (i32, i32) {
    %c0_i32 = arith.constant 0 : i32
    %c0_i32_0 = arith.constant 0 : i32
    %c0_i32_1 = arith.constant 0 : i32
    return %c0_i32, %c0_i32_0 : i32, i32
  }
  func.func @transform_3(%arg0: i32) -> (i32, i32) {
    %c0_i32 = arith.constant 0 : i32
    %c0_i32_0 = arith.constant 0 : i32
    %c0_i32_1 = arith.constant 0 : i32
    return %c0_i32, %c0_i32_0 : i32, i32
  }
  func.func @transform_4(%arg0: i32) -> (i32, i32) {
    %c0_i32 = arith.constant 0 : i32
    %c0_i32_0 = arith.constant 0 : i32
    %c0_i32_1 = arith.constant 0 : i32
    return %c0_i32, %c0_i32_0 : i32, i32
  }
  func.func @transform_5(%arg0: i32) -> (i32, i32) {
    %c0_i32 = arith.constant 0 : i32
    %c0_i32_0 = arith.constant 0 : i32
    %c0_i32_1 = arith.constant 0 : i32
    return %c0_i32, %c0_i32_0 : i32, i32
  }
}

</mosaic_0001>

<bundles_post_ra>
// kernel: tpu_custom_call.1
= control target key start
LH: loop header
LB: loop body
LE: loop exit
PB: predicated region body
PF: predicated region fallthrough
CT: control target
= control target key end

     0   :  { %v581_v1 = vmov 0   ;;  %vm151_vm0 = vcmask 556032   ;;  %s738_s0 = inlined_call_operand.vmem [shape: bf16[32,196], index: 0, kind: input, shape index: {}]   ;;  %s739_s1 = inlined_call_operand.vmem [shape: bf16[196,8], index: 1, kind: input, shape index: {}]   ;;  %s740_s2 = inlined_call_operand.vmem [shape: f32[1,8], index: 2, kind: input, shape index: {}]   ;;  %s741_s3 = inlined_call_operand.vmem [shape: bf16[128,32], index: 3, kind: input, shape index: {}]   ;;  %s742_s4 = inlined_call_operand.vmem [shape: f32[1,32], index: 4, kind: input, shape index: {}]   ;;  %s743_s5 = inlined_call_operand.hbm [shape: f32[2,32], index: 5, kind: output, shape index: {}]  }
   0x1   :  { %v530_v0 = vld [vmem:[%s739_s1] sm:$0xff]   ;;  %162 = vmatprep.subr.bf16.mxu0 %v581_v1  ;;  %v531_v2 = vld [vmem:[%s739_s1 + $0x8] sm:$0xff]   ;;  %v532_v3 = vld [vmem:[%s739_s1 + $0x10] sm:$0xff]  }
   0x2   :  { %163 = vmatpush1.bf16.msra.mxu0 %v530_v0  ;;  %v533_v4 = vld [vmem:[%s739_s1 + $0x18] sm:$0xff]   ;;  %v545_v5 = vld [vmem:[%s738_s0 + $0x4] ss:$8 sps:$4 sm:$0xff]  }
   0x3   :  { %164 = vmatprep.subr.bf16.mxu0 %v581_v1  ;;  %v534_v6 = vld [vmem:[%s739_s1 + $0x20] sm:$0xff]   ;;  %471 = vmatprep.mubr.msk.bf16.mxu0 %vm151_vm0, %v545_v5  ;;  %v535_v7 = vld [vmem:[%s739_s1 + $0x28] sm:$0xff]  }
   0x6   :  { %165 = vmatpush1.bf16.msra.mxu0 %v531_v2 }
   0x7   :  { %166 = vmatprep.subr.bf16.mxu0 %v581_v1 }
   0xa   :  { %167 = vmatpush1.bf16.msra.mxu0 %v532_v3 }
   0xb   :  { %168 = vmatprep.subr.bf16.mxu0 %v581_v1 }
   0xe   :  { %169 = vmatpush1.bf16.msra.mxu0 %v533_v4 }
   0xf   :  { %170 = vmatprep.subr.bf16.mxu0 %v581_v1 }
  0x12   :  { %171 = vmatpush1.bf16.msra.mxu0 %v534_v6 }
  0x13   :  { %172 = vmatprep.subr.bf16.mxu0 %v581_v1 }
  0x14   :  { %10 = vsyncpa [#allocation5], 0  ;;  %v536_v8 = vld [vmem:[%s739_s1 + $0x30] sm:$0xff]   ;;  %v537_v9 = vld [vmem:[%s739_s1 + $0x38] sm:$0xff]   ;;  %vm158_vm1 = vcmask 1041408   ;;  %vm211_vm2 = vcmask 64512  }
  0x15   :  { %v538_v10 = vld [vmem:[%s739_s1 + $0x40] sm:$0xff]   ;;  %v539_v11 = vld [vmem:[%s739_s1 + $0x48] sm:$0xff]   ;;  %v540_v12 = vld [vmem:[%s739_s1 + $0x50] sm:$0xff]   ;;  %v582_v27 = vmov 0.0   ;;  %vm217_vm3 = vcmask 58368   ;;  %s583_s7 = smov 24  }
  0x16   :  { %173 = vmatpush1.bf16.msra.mxu0 %v535_v7  ;;  %v541_v13 = vld [vmem:[%s739_s1 + $0x58] sm:$0xff]   ;;  %v542_v14 = vld [vmem:[%s739_s1 + $0x60] ss:$0 sps:$4 sm:$0x33]   ;;  %491 = vmatprep.subr.bf16.mxu1 %v582_v27  ;;  %v550_v28 = vld [vmem:[%s741_s3 + $0x8] sm:$0xff]   ;;  %s584_s8 = smov 8  }
  0x17   :  { %174 = vmatprep.subr.bf16.mxu0 %v581_v1  ;;  %v160_v15 = vsel %vm158_vm1, %v542_v14, 0  ;;  %v543_v16 = vld [vmem:[%s738_s0] ss:$8 sps:$4 sm:$0xff]   ;;  %v546_v17 = vld [vmem:[%s738_s0 + $0x14] ss:$8 sps:$4 sm:$0xff]   ;;  %s585_s11 = smov 32  }
  0x18   :  { %v548_v18 = vld [vmem:[%s738_s0 + $0x10] ss:$8 sps:$4 sm:$0xff]   ;;  %v453_v19 = vld [vmem:[%s740_s2] ss:$0 sm:$0xff]  ;;  %s586_s12 = smov 16   ;;  %s587_s13 = smov 48  }
  0x19   :  { %v549_v26 = vld [vmem:[%s741_s3] sm:$0xff]   ;;  %v551_v35 = vld [vmem:[%s741_s3 + $0x10] sm:$0xff]   ;;  %v552_v41 = vld [vmem:[%s741_s3 + $0x18] sm:$0xff]   ;;  %s588_s14 = smov 40   ;;  %s589_s19 = smov 64   ;;  %vm593_vm4 = vmmov 0  }
  0x1a   :  { %175 = vmatpush1.bf16.msra.mxu0 %v536_v8  ;;  %492 = vmatpush3.bf16.msra.mxu1 %v549_v26  ;;  %v553_v44 = vld [vmem:[%s741_s3 + $0x20] sm:$0xff]   ;;  %v554_v47 = vld [vmem:[%s741_s3 + $0x28] sm:$0xff]   ;;  %s590_s20 = smov 56   ;;  %v555_v50 = vld [vmem:[%s741_s3 + $0x30] sm:$0xff]   ;;  %s591_s23 = smov 80   ;;  %vm224_vm5 = vcmask 123968  }
  0x1b   :  { %176 = vmatprep.subr.bf16.mxu0 %v581_v1  ;;  %493 = vmatprep.subr.bf16.mxu1 %v582_v27  ;;  %s592_s24 = smov 72   ;;  %v556_v51 = vld [vmem:[%s741_s3 + $0x38] sm:$0xff]   ;;  %s594_s1 = smov 96   ;;  %vm231_vm6 = vcmask 189568   ;;  %vm238_vm7 = vcmask 255168   ;;  %vm245_vm8 = vcmask 320768  }
  0x1c   :  { %507 = vmatprep.mubr.msk.bf16.mxu1 %vm593_vm4, %v582_v27  ;;  %s595_s27 = smov 88   ;;  %s596_s28 = smov 112   ;;  %vm252_vm9 = vcmask 386368   ;;  %vm259_vm10 = vcmask 451968   ;;  %vm266_vm11 = vcmask 517568   ;;  %vm273_vm12 = vcmask 583168  }
  0x1d   :  { %s597_s29 = smov 104   ;;  %s598_s0 = smov 120   ;;  %vm280_vm13 = vcmask 648768   ;;  %vm287_vm14 = vcmask 714368   ;;  %vm294_vm15 = vcmask 779968   ;;  %vm308_vm1 = vcmask 911168  }
  0x1e   :  { %177 = vmatpush1.bf16.msra.mxu0 %v537_v9  ;;  %494 = vmatpush3.bf16.msra.mxu1 %v550_v28  ;;  %s599_s30 = smov [#allocation4]   ;;  %vm437_vm4 = vcmask 254976  }
  0x1f   :  { %178 = vmatprep.subr.bf16.mxu0 %v581_v1  ;;  %495 = vmatprep.subr.bf16.mxu1 %v582_v27  ;;  %s445_s6 = sshll.u32 %s599_s30, 4  ;;  %s446_s6 = int_to_ptr.vmem [resolvable:$true] %s445_s6 }
  0x20   :  { %p562_p1 = scmp.lt.s32.totalorder %s446_s6, %s446_s6 }
  0x22   :  { %179 = vmatpush1.bf16.msra.mxu0 %v538_v10  ;;  %496 = vmatpush3.bf16.msra.mxu1 %v551_v35  ;;  %v473_v10 = vld [vmem:[%s742_s4] ss:$0 sm:$0xff] }
  0x23   :  { %180 = vmatprep.subr.bf16.mxu0 %v581_v1  ;;  %497 = vmatprep.subr.bf16.mxu1 %v582_v27 }
  0x26   :  { %181 = vmatpush1.bf16.msra.mxu0 %v539_v11  ;;  %498 = vmatpush3.bf16.msra.mxu1 %v552_v41 }
  0x27   :  { %182 = vmatprep.subr.bf16.mxu0 %v581_v1  ;;  %499 = vmatprep.subr.bf16.mxu1 %v582_v27 }
  0x2a   :  { %183 = vmatpush1.bf16.msra.mxu0 %v540_v12  ;;  %500 = vmatpush3.bf16.msra.mxu1 %v553_v44 }
  0x2b   :  { %184 = vmatprep.subr.bf16.mxu0 %v581_v1  ;;  %501 = vmatprep.subr.bf16.mxu1 %v582_v27 }
  0x2e   :  { %185 = vmatpush1.bf16.msra.mxu0 %v541_v13  ;;  %502 = vmatpush3.bf16.msra.mxu1 %v554_v47 }
  0x2f   :  { %186 = vmatprep.subr.bf16.mxu0 %v581_v1  ;;  %503 = vmatprep.subr.bf16.mxu1 %v582_v27 }
  0x32   :  { %187 = vmatpush1.bf16.msra.mxu0 %v160_v15  ;;  %504 = vmatpush3.bf16.msra.mxu1 %v555_v50 }
  0x33   :  { %505 = vmatprep.subr.bf16.mxu1 %v582_v27 }
  0x35   :  { %195 = vmatmul.mubr.bf16.vlgmr.msra.gmra.mrb[0].mxu0 %v543_v16 }
  0x36   :  { %472 = vmatprep.mubr.msk.bf16.mxu0 %vm151_vm0, %v546_v17  ;;  %506 = vmatpush3.bf16.msra.mxu1 %v556_v51  ;;  %vm301_vm0 = vcmask 845568  }
  0x3d   :  { %203 = vmatmul.mubr.bf16.gmra.mrb[4].mxu0 %v548_v18 }
 0x108   :  { %v196_v20 = vpop.f32.mrb[0].mxu0 }
 0x109   :  { %v197_v21 = vadd.f32 %v453_v19, %v196_v20  ;;  %v198_v22 = vpop.f32.mrb[1].mxu0 }
 0x10a   :  { %v199_v23 = vpop.f32.mrb[2].mxu0 }
 0x10b   :  { %212 = vst.msk [vmem:[#allocation2] sm:$0xff] %vm211_vm2, %v197_v21  ;;  %v200_v24 = vadd.f32 %v453_v19, %v199_v23  ;;  %v201_v25 = vpop.f32.mrb[3].mxu0 }
 0x10d   :  { %213 = vst.msk [vmem:[#allocation2 + $0x8] sm:$0xff] %vm211_vm2, %v200_v24 }
 0x110   :  { %v204_v29 = vpop.f32.mrb[4].mxu0 }
 0x111   :  { %v205_v30 = vadd.f32 %v453_v19, %v204_v29  ;;  %v206_v31 = vpop.f32.mrb[5].mxu0 }
 0x112   :  { %v233_v32 = vld [vmem:[#allocation2 + $0x6] sm:$0x3]  ;;  %v219_v33 = vld [vmem:[#allocation2 + $0x2] sm:$0x3]  ;;  %v207_v34 = vpop.f32.mrb[6].mxu0 }
 0x113   :  { %235 = vrot.lane.b32.xlu1 %v233_v32, %s583_s7  ;;  %221 = vrot.lane.b32.xlu0 %v219_v33, %s584_s8  ;;  %214 = vst.msk [vmem:[#allocation2 + $0x10] sm:$0xff] %vm211_vm2, %v205_v30  ;;  %v208_v36 = vadd.f32 %v453_v19, %v207_v34  ;;  %v209_v37 = vpop.f32.mrb[7].mxu0  ;;  %v216_v38 = vld [vmem:[#allocation2] sm:$0x3]  ;;  %v226_v40 = vld [vmem:[#allocation2 + $0x4] sm:$0x3] }
 0x114   :  { %218 = vst.msk [vmem:[#allocation3] sm:$0x3] %vm217_vm3, %v216_v38  ;;  %v240_v39 = vld [vmem:[#allocation2 + $0x8] sm:$0x3]  ;;  %v254_v42 = vld [vmem:[#allocation2 + $0xc] sm:$0x3] }
 0x115   :  { %215 = vst.msk [vmem:[#allocation2 + $0x18] sm:$0xff] %vm211_vm2, %v208_v36  ;;  %v247_v43 = vld [vmem:[#allocation2 + $0xa] sm:$0x3]  ;;  %v261_v46 = vld [vmem:[#allocation2 + $0xe] sm:$0x3]  ;;  %vm315_vm2 = vcmask 976768  }
 0x116   :  { %vm322_vm3 = vcmask 1042368   ;;  %s557_s7 = scalar_lea.vmem %s446_s6, 32 }
 0x117   :  { %242 = vrot.lane.b32.xlu1 %v240_v39, %s585_s11  ;;  %228 = vrot.lane.b32.xlu0 %v226_v40, %s586_s12  ;;  %p558_p0 = scmp.ne.s32.totalorder %s446_s6, %s557_s7  ;;  %p563_p2 = scmp.lt.s32.totalorder %s557_s7, %s557_s7 }
 0x119   :  { %p564_p3 = por %p563_p2, %p562_p1 }
 0x11a   :  { %v268_v45 = vld [vmem:[#allocation2 + $0x10] sm:$0x3]  ;;  %v282_v48 = vld [vmem:[#allocation2 + $0x14] sm:$0x3]  ;;  %v275_v49 = vld [vmem:[#allocation2 + $0x12] sm:$0x3] }
 0x11b   :  { %256 = vrot.lane.b32.xlu1 %v254_v42, %s587_s13  ;;  %249 = vrot.lane.b32.xlu0 %v247_v43, %s588_s14  ;;  %v289_v53 = vld [vmem:[#allocation2 + $0x16] sm:$0x3]  ;;  %p565_p4 = pnand %p564_p3, %p558_p0 }
 0x11c   :  { %v296_v52 = vld [vmem:[#allocation2 + $0x18] sm:$0x3]  ;;  %v310_v54 = vld [vmem:[#allocation2 + $0x1c] sm:$0x3]  ;;  %v303_v55 = vld [vmem:[#allocation2 + $0x1a] sm:$0x3] }
 0x11d   :  { %v317_v56 = vld [vmem:[#allocation2 + $0x1e] sm:$0x3] }
 0x11f   :  { %270 = vrot.lane.b32.xlu1 %v268_v45, %s589_s19  ;;  %263 = vrot.lane.b32.xlu0 %v261_v46, %s590_s20 }
 0x123   :  { %284 = vrot.lane.b32.xlu1 %v282_v48, %s591_s23  ;;  %277 = vrot.lane.b32.xlu0 %v275_v49, %s592_s24 }
 0x127   :  { %298 = vrot.lane.b32.xlu1 %v296_v52, %s594_s1  ;;  %291 = vrot.lane.b32.xlu0 %v289_v53, %s595_s27 }
 0x12b   :  { %312 = vrot.lane.b32.xlu1 %v310_v54, %s596_s28  ;;  %305 = vrot.lane.b32.xlu0 %v303_v55, %s597_s29 }
 0x12f   :  { %319 = vrot.lane.b32.xlu0 %v317_v56, %s598_s0 }
 0x185   :  { %v236_v57 = vpop.permute.xlu1 %235  ;;  %v222_v58 = vpop.permute.xlu0 %221 }
 0x186   :  { %225 = vst.msk [vmem:[#allocation3] sm:$0x3] %vm224_vm5, %v222_v58 }
 0x189   :  { %v243_v59 = vpop.permute.xlu1 %242  ;;  %v229_v60 = vpop.permute.xlu0 %228 }
 0x18a   :  { %232 = vst.msk [vmem:[#allocation3] sm:$0x3] %vm231_vm6, %v229_v60 }
 0x18b   :  { %239 = vst.msk [vmem:[#allocation3] sm:$0x3] %vm238_vm7, %v236_v57 }
 0x18c   :  { %246 = vst.msk [vmem:[#allocation3] sm:$0x3] %vm245_vm8, %v243_v59 }
 0x18d   :  { %v257_v61 = vpop.permute.xlu1 %256  ;;  %v250_v62 = vpop.permute.xlu0 %249 }
 0x18e   :  { %253 = vst.msk [vmem:[#allocation3] sm:$0x3] %vm252_vm9, %v250_v62 }
 0x18f   :  { %260 = vst.msk [vmem:[#allocation3] sm:$0x3] %vm259_vm10, %v257_v61 }
 0x191   :  { %v271_v63 = vpop.permute.xlu1 %270  ;;  %v264_v0 = vpop.permute.xlu0 %263 }
 0x192   :  { %267 = vst.msk [vmem:[#allocation3] sm:$0x3] %vm266_vm11, %v264_v0 }
 0x193   :  { %274 = vst.msk [vmem:[#allocation3] sm:$0x3] %vm273_vm12, %v271_v63 }
 0x195   :  { %v285_v1 = vpop.permute.xlu1 %284  ;;  %v278_v2 = vpop.permute.xlu0 %277 }
 0x196   :  { %281 = vst.msk [vmem:[#allocation3] sm:$0x3] %vm280_vm13, %v278_v2 }
 0x197   :  { %288 = vst.msk [vmem:[#allocation3] sm:$0x3] %vm287_vm14, %v285_v1 }
 0x199   :  { %v299_v3 = vpop.permute.xlu1 %298  ;;  %v292_v4 = vpop.permute.xlu0 %291 }
 0x19a   :  { %295 = vst.msk [vmem:[#allocation3] sm:$0x3] %vm294_vm15, %v292_v4 }
 0x19b   :  { %302 = vst.msk [vmem:[#allocation3] sm:$0x3] %vm301_vm0, %v299_v3 }
 0x19d   :  { %v313_v5 = vpop.permute.xlu1 %312  ;;  %v306_v6 = vpop.permute.xlu0 %305 }
 0x19e   :  { %309 = vst.msk [vmem:[#allocation3] sm:$0x3] %vm308_vm1, %v306_v6 }
 0x19f   :  { %316 = vst.msk [vmem:[#allocation3] sm:$0x3] %vm315_vm2, %v313_v5 }
 0x1a1   :  { %v320_v7 = vpop.permute.xlu0 %319 }
 0x1a2   :  { %323 = vst.msk [vmem:[#allocation3] sm:$0x3] %vm322_vm3, %v320_v7 }
 0x1a9   :  { %v324_v8 = vld [vmem:[#allocation3] sm:$0x3] }
 0x1aa   :  { %v325_v9 = vpack.c.bf16 %v324_v8, %v324_v8 }
 0x1ac   :  { %508 = vmatmul.mubr.bf16.vlgmr.msra.gmra.mrb[0].mxu1 %v325_v9 }
 0x27f   :  { %v431_v11 = vpop.f32.mrb[0].mxu1 }
 0x280   :  { %v432_v12 = vadd.f32 %v473_v10, %v431_v11  ;;  %v509_v13 = vpop.f32.mrb[1].mxu1 }
 0x281   :  { %v434_v14 = vpop.f32.mrb[2].mxu1 }
 0x282   :  { %v510_v15 = vpop.f32.mrb[3].mxu1  ;;  %438 = vst.msk [vmem:[#allocation4] sm:$0x3] %vm437_vm4, %v432_v12 }
 0x283   :  { %568 = shalt.err (!%p565_p4)
}
 0x284   :  { %s569_s4 = scalar_lea.hbm %s743_s5, 32 }
 0x285   :  { %p570_p5 = scmp.ne.s32.totalorder %s743_s5, %s569_s4  ;;  %p573_p6 = scmp.lt.u32.totalorder %s569_s4, %s743_s5 }
 0x287   :  { %p575_p7 = pnand %p573_p6, %p570_p5 }
 0x289   :  { %578 = shalt.err (!%p575_p7)
}
 0x28a   :  { %448 = dma.vmem_to_hbm [thread:$0]  %s446_s6, 32, %s743_s5, [#allocation5]  }
 0x28b   :  { %579 = dma.done.wait [#allocation5], 32  }
 0x28c   :  { %580 = vsyncadd [#allocation5], 4294967264 }
 0x28d   :  { %452 = vsyncpa [#allocation5], 1 }

</bundles_post_ra>
